<compile_context>
chip_gen: v7x
topology: tpu7x:2x2x1
jax: 0.10.0
libtpu: 0.0.40
codegen_flags: <defaults>
</compile_context>

<pallas_src>
import functools
import math

import jax
import jax.numpy as jnp
from jax.experimental import pallas as pl
from jax.experimental.pallas import tpu as pltpu

BN_EPS = 1e-5


def _round_up(x, m):
    return ((x + m - 1) // m) * m


def _pick_tile(dim, candidates):
    for c in candidates:
        if dim % c == 0:
            return c
    return candidates[-1]


# ----------------------------------------------------------------------------------
# Pallas kernels
# ----------------------------------------------------------------------------------
def _mm_affine_kernel(a_ref, b_ref, s_ref, c_ref, *rest, relu, has_residual):
    """K-tiled matmul with f32 accumulator and fused affine(+residual)(+ReLU) epilogue."""
    if has_residual:
        r_ref, o_ref, acc_ref = rest
    else:
        o_ref, acc_ref = rest
    k = pl.program_id(2)

    @pl.when(k == 0)
    def _():
        acc_ref[...] = jnp.zeros_like(acc_ref)

    acc_ref[...] += jnp.dot(a_ref[...], b_ref[...],
                            preferred_element_type=jnp.float32)

    @pl.when(k == pl.num_programs(2) - 1)
    def _():
        out = acc_ref[...] * s_ref[...] + c_ref[...]
        if has_residual:
            out = out + r_ref[...]
        if relu:
            out = jnp.maximum(out, 0.0)
        o_ref[...] = out.astype(o_ref.dtype)


def matmul_affine(a, b, scale, bias, relu=False, residual=None):
    """out = relu_opt((a @ b) * scale + bias [+ residual]).

    a: (M, K), b: (K, N); scale/bias per output column; residual optional (M, N).
    A and B are cast to bf16 for the MXU; accumulation and the epilogue stay in f32.
    All dims are zero-padded to lane/sublane-aligned tiles (output sliced back).
    """
    M, K = a.shape
    K2, N = b.shape
    assert K == K2
    has_residual = residual is not None

    # Lane/sublane-aligned padded extents and tile sizes.
    M_pad = _round_up(M, 8)
    N_pad = _round_up(N, 128)
    K_pad = _round_up(K, 128)
    tm = _pick_tile(M_pad, (512, 256, 128, 64, 32, 16, 8))
    tn = _pick_tile(N_pad, (256, 128))
    tk = _pick_tile(K_pad, (512, 384, 256, 128))

    a = jnp.pad(a.astype(jnp.bfloat16), ((0, M_pad - M), (0, K_pad - K)))
    b = jnp.pad(b.astype(jnp.bfloat16), ((0, K_pad - K), (0, N_pad - N)))
    s = jnp.pad(scale.reshape(1, N).astype(jnp.float32), ((0, 0), (0, N_pad - N)))
    c = jnp.pad(bias.reshape(1, N).astype(jnp.float32), ((0, 0), (0, N_pad - N)))

    in_specs = [
        pl.BlockSpec((tm, tk), lambda i, j, k: (i, k)),
        pl.BlockSpec((tk, tn), lambda i, j, k: (k, j)),
        pl.BlockSpec((1, tn), lambda i, j, k: (0, j)),
        pl.BlockSpec((1, tn), lambda i, j, k: (0, j)),
    ]
    operands = [a, b, s, c]
    if has_residual:
        r = jnp.pad(residual.astype(jnp.float32), ((0, M_pad - M), (0, N_pad - N)))
        in_specs.append(pl.BlockSpec((tm, tn), lambda i, j, k: (i, j)))
        operands.append(r)

    out = pl.pallas_call(
        functools.partial(_mm_affine_kernel, relu=relu, has_residual=has_residual),
        out_shape=jax.ShapeDtypeStruct((M_pad, N_pad), jnp.float32),
        grid=(M_pad // tm, N_pad // tn, K_pad // tk),
        in_specs=in_specs,
        out_specs=pl.BlockSpec((tm, tn), lambda i, j, k: (i, j)),
        scratch_shapes=[pltpu.VMEM((tm, tn), jnp.float32)],
        compiler_params=pltpu.CompilerParams(
            dimension_semantics=("parallel", "parallel", "arbitrary"),
            vmem_limit_bytes=48 * 1024 * 1024),
    )(*operands)
    return out[:M, :N]


def _lstm_kernel(gx_ref, whh_ref, f_ref, h_sc, c_sc, *, T, H):
    s = pl.program_id(0)

    @pl.when(s == 0)
    def _():
        h_sc[...] = jnp.zeros_like(h_sc)
        c_sc[...] = jnp.zeros_like(c_sc)
        f_ref[...] = jnp.zeros_like(f_ref)

    # gx already contains W_ih @ x_t + b_ih + b_hh
    gates = gx_ref[0] + jnp.dot(h_sc[...], whh_ref[...],
                                preferred_element_type=jnp.float32)
    i = jax.nn.sigmoid(gates[:, 0:H])
    f = jax.nn.sigmoid(gates[:, H:2 * H])
    g = jnp.tanh(gates[:, 2 * H:3 * H])
    o = jax.nn.sigmoid(gates[:, 3 * H:4 * H])
    c = f * c_sc[...] + i * g
    h = o * jnp.tanh(c)
    c_sc[...] = c
    h_sc[...] = h
    # fused temporal average pooling (F.avg_pool1d over the full sequence);
    # only the averaged feature is ever written to HBM (hs stays in VMEM).
    f_ref[...] += h * (1.0 / T)


def lstm_avg_pallas(gates_x_tbh, w_hh_t, b, t, hidden):
    """gates_x_tbh: (t, b, 4H), w_hh_t: (H, 4H). Returns f_avg (b, H)."""
    favg = pl.pallas_call(
        functools.partial(_lstm_kernel, T=t, H=hidden),
        out_shape=jax.ShapeDtypeStruct((b, hidden), jnp.float32),
        grid=(t,),
        in_specs=[pl.BlockSpec((1, b, 4 * hidden), lambda s: (s, 0, 0)),
                  pl.BlockSpec((hidden, 4 * hidden), lambda s: (0, 0))],
        out_specs=pl.BlockSpec((b, hidden), lambda s: (0, 0)),
        scratch_shapes=[pltpu.VMEM((b, hidden), jnp.float32),
                        pltpu.VMEM((b, hidden), jnp.float32)],
        compiler_params=pltpu.CompilerParams(dimension_semantics=("arbitrary",)),
    )(gates_x_tbh.astype(jnp.float32), w_hh_t.astype(jnp.float32))
    return favg


# ----------------------------------------------------------------------------------
# Plain-JAX glue: im2col, maxpool, parameter construction
# ----------------------------------------------------------------------------------
def extract_patches(x, kh, kw, stride, pad):
    """x: NHWC -> (N, Ho, Wo, kh*kw*Cin) patches (kh, kw, Cin ordering)."""
    N, H, W, C = x.shape
    if pad > 0:
        x = jnp.pad(x, ((0, 0), (pad, pad), (pad, pad), (0, 0)))
    Ho = (H + 2 * pad - kh) // stride + 1
    Wo = (W + 2 * pad - kw) // stride + 1
    cols = []
    for dh in range(kh):
        for dw in range(kw):
            cols.append(x[:, dh:dh + stride * (Ho - 1) + 1:stride,
                            dw:dw + stride * (Wo - 1) + 1:stride, :])
    return jnp.concatenate(cols, axis=-1), Ho, Wo


def conv_bn(x, w_oihw, bn, stride, pad, relu, residual=None):
    """Conv2d (no bias) + folded BatchNorm (+optional fused residual/ReLU)."""
    scale, shift = bn
    N = x.shape[0]
    Cout, Cin, kh, kw = w_oihw.shape
    # patches materialized in bf16 (halves HBM traffic of the im2col matrix)
    cols, Ho, Wo = extract_patches(x.astype(jnp.bfloat16), kh, kw, stride, pad)
    A = cols.reshape(N * Ho * Wo, kh * kw * Cin)
    B = jnp.transpose(w_oihw, (2, 3, 1, 0)).reshape(kh * kw * Cin, Cout)
    res2 = residual.reshape(-1, Cout) if residual is not None else None
    out = matmul_affine(A, B, scale, shift, relu=relu, residual=res2)
    return out.reshape(N, Ho, Wo, Cout)


def maxpool_3x3_s2_p1(x):
    N, H, W, C = x.shape
    xp = jnp.pad(x, ((0, 0), (1, 1), (1, 1), (0, 0)), constant_values=-jnp.inf)
    Ho = (H + 2 - 3) // 2 + 1
    Wo = (W + 2 - 3) // 2 + 1
    out = None
    for dh in range(3):
        for dw in range(3):
            v = xp[:, dh:dh + 2 * (Ho - 1) + 1:2, dw:dw + 2 * (Wo - 1) + 1:2, :]
            out = v if out is None else jnp.maximum(out, v)
    return out


def bn_fold(c):
    gamma = jnp.ones((c,), jnp.float32)
    beta = jnp.zeros((c,), jnp.float32)
    mean = jnp.zeros((c,), jnp.float32)
    var = jnp.ones((c,), jnp.float32)
    scale = gamma / jnp.sqrt(var + BN_EPS)
    shift = beta - mean * scale
    return scale, shift


def conv_init(key, cout, cin, kh, kw):
    n = kh * kw * cout
    return jax.random.normal(key, (cout, cin, kh, kw), jnp.float32) * math.sqrt(2.0 / n)


def make_resnet50_params(key):
    keys = iter(jax.random.split(key, 256))
    params = {'conv1': conv_init(next(keys), 64, 3, 7, 7), 'bn1': bn_fold(64)}
    inplanes = 64
    layers_cfg = [(64, 3, 1), (128, 4, 2), (256, 6, 2), (512, 3, 2)]
    for li, (planes, nblocks, stride) in enumerate(layers_cfg, start=1):
        blocks = []
        for bi in range(nblocks):
            s = stride if bi == 0 else 1
            blk = {
                'conv1': conv_init(next(keys), planes, inplanes, 1, 1),
                'bn1': bn_fold(planes),
                'conv2': conv_init(next(keys), planes, planes, 3, 3),
                'bn2': bn_fold(planes),
                'conv3': conv_init(next(keys), planes * 4, planes, 1, 1),
                'bn3': bn_fold(planes * 4),
                'stride': s,
            }
            if s != 1 or inplanes != planes * 4:
                blk['down_conv'] = conv_init(next(keys), planes * 4, inplanes, 1, 1)
                blk['down_bn'] = bn_fold(planes * 4)
            blocks.append(blk)
            inplanes = planes * 4
        params[f'layer{li}'] = blocks
    return params


def make_lstm_params(key, input_size, hidden):
    k = 1.0 / math.sqrt(hidden)
    k1, k2, k3, k4 = jax.random.split(key, 4)
    w_ih = jax.random.uniform(k1, (4 * hidden, input_size), jnp.float32, -k, k)
    w_hh = jax.random.uniform(k2, (4 * hidden, hidden), jnp.float32, -k, k)
    b_ih = jax.random.uniform(k3, (4 * hidden,), jnp.float32, -k, k)
    b_hh = jax.random.uniform(k4, (4 * hidden,), jnp.float32, -k, k)
    return w_ih, w_hh, b_ih, b_hh


# ----------------------------------------------------------------------------------
# Model forward
# ----------------------------------------------------------------------------------
def bottleneck_forward(x, p):
    out = conv_bn(x, p['conv1'], p['bn1'], stride=1, pad=0, relu=True)
    out = conv_bn(out, p['conv2'], p['bn2'], stride=p['stride'], pad=1, relu=True)
    if 'down_conv' in p:
        residual = conv_bn(x, p['down_conv'], p['down_bn'],
                           stride=p['stride'], pad=0, relu=False)
    else:
        residual = x
    # conv3 + bn3 + residual add + ReLU fused into one Pallas kernel epilogue
    out = conv_bn(out, p['conv3'], p['bn3'], stride=1, pad=0, relu=True,
                  residual=residual)
    return out


def resnet50_backbone(x_nhwc, params):
    x = conv_bn(x_nhwc, params['conv1'], params['bn1'], stride=2, pad=3, relu=True)
    x = maxpool_3x3_s2_p1(x)
    for li in range(1, 5):
        for blk in params[f'layer{li}']:
            x = bottleneck_forward(x, blk)
    return x  # (N, H/32, W/32, 2048)


def tempo_rnn_forward(x, resnet_params, lstm_params, w_cls, training=True):
    """x: (b, t, C, H, W) float32 (PyTorch NCHW frames)."""
    b, t, C, H, W = x.shape
    x = x.reshape(b * t, C, H, W).transpose(0, 2, 3, 1)          # -> NHWC
    feat = resnet50_backbone(x.astype(jnp.float32), resnet_params)
    N, hh, ww, Cf = feat.shape
    feat = feat.reshape(N, hh * ww, Cf).mean(axis=1)             # global avg pool -> (b*t, 2048)

    w_ih, w_hh, b_ih, b_hh = lstm_params
    hidden = w_hh.shape[1]
    # x @ W_ih^T + (b_ih + b_hh) for all timesteps (Pallas matmul, identity scale)
    gates_x = matmul_affine(feat, w_ih.T,
                            jnp.ones((4 * hidden,), jnp.float32), b_ih + b_hh)
    gates_x = gates_x.reshape(b, t, 4 * hidden).transpose(1, 0, 2)  # (t, b, 4H)
    f = lstm_avg_pallas(gates_x, w_hh.T, b, t, hidden)              # f: (b, hidden)

    if not training:
        return f
    # classifier: tiny (b x hidden x num_classes) GEMM — below Pallas per-step overhead
    y = jnp.dot(f, w_cls.T, preferred_element_type=jnp.float32)
    return y, f


# ----------------------------------------------------------------------------------
if __name__ == "__main__":
    key = jax.random.PRNGKey(0)
    kp, kl, kc, kx = jax.random.split(key, 4)

    b, t, C, H, W = 2, 4, 3, 32, 32
    num_classes = 10
    hidden_dim = 512
    feat_dim = 2048

    resnet_params = make_resnet50_params(kp)
    lstm_params = make_lstm_params(kl, feat_dim, hidden_dim)
    w_cls = 0.01 * jax.random.normal(kc, (num_classes, hidden_dim), jnp.float32)

    x = jax.random.normal(kx, (b, t, C, H, W), jnp.float32)

    y, f = tempo_rnn_forward(x, resnet_params, lstm_params, w_cls, training=True)
    jax.block_until_ready((y, f))

    assert y.shape == (b, num_classes), y.shape
    assert f.shape == (b, hidden_dim), f.shape
    assert jnp.all(jnp.isfinite(y)) and jnp.all(jnp.isfinite(f))
    print("KERNEL_OK")
</pallas_src>

<mosaic_0001>
module attributes {stable_mosaic.version = 11 : i64} {
  func.func @_mm_affine_kernel(%arg0: i32, %arg1: i32, %arg2: i32, %arg3: memref<512x256xbf16, #tpu.memory_space<vmem>>, %arg4: memref<256x128xbf16, #tpu.memory_space<vmem>>, %arg5: memref<1x128xf32, #tpu.memory_space<vmem>>, %arg6: memref<1x128xf32, #tpu.memory_space<vmem>>, %arg7: memref<512x128xf32, #tpu.memory_space<vmem>>, %arg8: memref<512x128xf32, #tpu.memory_space<vmem>>) attributes {dimension_semantics = [#tpu.dimension_semantics<parallel>, #tpu.dimension_semantics<parallel>, #tpu.dimension_semantics<arbitrary>], iteration_bounds = array<i64: 4, 1, 1>, scalar_prefetch = 0 : i64, scratch_operands = 1 : i64, tpu.core_type = #tpu.core_type<tc>, window_params = [{transform_indices = @transform_0, window_bounds = array<i64: 512, 256>}, {transform_indices = @transform_1, window_bounds = array<i64: 256, 128>}, {transform_indices = @transform_2, window_bounds = array<i64: 1, 128>}, {transform_indices = @transform_3, window_bounds = array<i64: 1, 128>}, {transform_indices = @transform_4, window_bounds = array<i64: 512, 128>}]} {
    %c0_i32 = arith.constant 0 : i32
    %0 = arith.cmpi eq, %arg2, %c0_i32 : i32
    %1 = arith.extui %0 : i1 to i32
    %c0_i32_0 = arith.constant 0 : i32
    %2 = arith.cmpi ne, %1, %c0_i32_0 : i32
    scf.if %2 {
      %cst_10 = arith.constant 0.000000e+00 : f32
      %12 = vector.broadcast %cst_10 : f32 to vector<512x128xf32>
      %c0_11 = arith.constant 0 : index
      %c0_12 = arith.constant 0 : index
      %13 = vector.load %arg8[%c0_11, %c0_12] : memref<512x128xf32, #tpu.memory_space<vmem>>, vector<512x128xf32>
      tpu.vector_store %arg8[%c0_11, %c0_12], %12 {strides = array<i32>} : memref<512x128xf32, #tpu.memory_space<vmem>>, vector<512x128xf32>,
    } else {
    }
    %c0 = arith.constant 0 : index
    %c0_1 = arith.constant 0 : index
    %3 = vector.load %arg8[%c0, %c0_1] : memref<512x128xf32, #tpu.memory_space<vmem>>, vector<512x128xf32>
    %c0_2 = arith.constant 0 : index
    %c0_3 = arith.constant 0 : index
    %4 = vector.load %arg3[%c0_2, %c0_3] : memref<512x256xbf16, #tpu.memory_space<vmem>>, vector<512x256xbf16>
    %c0_4 = arith.constant 0 : index
    %c0_5 = arith.constant 0 : index
    %5 = vector.load %arg4[%c0_4, %c0_5] : memref<256x128xbf16, #tpu.memory_space<vmem>>, vector<256x128xbf16>
    %cst = arith.constant dense<0.000000e+00> : vector<512x128xf32>
    %6 = tpu.matmul %4, %5, %cst {dimension_numbers = #tpu.dot_dimension_numbers<[1], [0], [0], [1], [0, 0, 1, 1], [], []>} : vector<512x256xbf16>, vector<256x128xbf16>, vector<512x128xf32> -> vector<512x128xf32>
    %7 = arith.addf %3, %6 : vector<512x128xf32>
    %c0_6 = arith.constant 0 : index
    %c0_7 = arith.constant 0 : index
    %8 = vector.load %arg8[%c0_6, %c0_7] : memref<512x128xf32, #tpu.memory_space<vmem>>, vector<512x128xf32>
    tpu.vector_store %arg8[%c0_6, %c0_7], %7 {strides = array<i32>} : memref<512x128xf32, #tpu.memory_space<vmem>>, vector<512x128xf32>,
    %c0_i32_8 = arith.constant 0 : i32
    %9 = arith.cmpi eq, %arg2, %c0_i32_8 : i32
    %10 = arith.extui %9 : i1 to i32
    %c0_i32_9 = arith.constant 0 : i32
    %11 = arith.cmpi ne, %10, %c0_i32_9 : i32
    scf.if %11 {
      %c0_10 = arith.constant 0 : index
      %c0_11 = arith.constant 0 : index
      %12 = vector.load %arg8[%c0_10, %c0_11] : memref<512x128xf32, #tpu.memory_space<vmem>>, vector<512x128xf32>
      %c0_12 = arith.constant 0 : index
      %c0_13 = arith.constant 0 : index
      %13 = vector.load %arg5[%c0_12, %c0_13] : memref<1x128xf32, #tpu.memory_space<vmem>>, vector<1x128xf32>
      %14 = vector.broadcast %13 : vector<1x128xf32> to vector<512x128xf32>
      %15 = arith.mulf %12, %14 : vector<512x128xf32>
      %c0_14 = arith.constant 0 : index
      %c0_15 = arith.constant 0 : index
      %16 = vector.load %arg6[%c0_14, %c0_15] : memref<1x128xf32, #tpu.memory_space<vmem>>, vector<1x128xf32>
      %17 = vector.broadcast %16 : vector<1x128xf32> to vector<512x128xf32>
      %18 = arith.addf %15, %17 : vector<512x128xf32>
      %cst_16 = arith.constant 0.000000e+00 : f32
      %19 = vector.broadcast %cst_16 : f32 to vector<512x128xf32>
      %20 = arith.maximumf %18, %19 : vector<512x128xf32>
      %c0_17 = arith.constant 0 : index
      %c0_18 = arith.constant 0 : index
      %21 = vector.load %arg7[%c0_17, %c0_18] : memref<512x128xf32, #tpu.memory_space<vmem>>, vector<512x128xf32>
      tpu.vector_store %arg7[%c0_17, %c0_18], %20 {strides = array<i32>} : memref<512x128xf32, #tpu.memory_space<vmem>>, vector<512x128xf32>,
    } else {
    }
    return
  }
  func.func @transform_0(%arg0: i32, %arg1: i32, %arg2: i32) -> (i32, i32) {
    %c0_i32 = arith.constant 0 : i32
    return %arg0, %arg2 : i32, i32
  }
  func.func @transform_1(%arg0: i32, %arg1: i32, %arg2: i32) -> (i32, i32) {
    %c0_i32 = arith.constant 0 : i32
    return %arg2, %arg1 : i32, i32
  }
  func.func @transform_2(%arg0: i32, %arg1: i32, %arg2: i32) -> (i32, i32) {
    %c0_i32 = arith.constant 0 : i32
    %c0_i32_0 = arith.constant 0 : i32
    return %c0_i32, %arg1 : i32, i32
  }
  func.func @transform_3(%arg0: i32, %arg1: i32, %arg2: i32) -> (i32, i32) {
    %c0_i32 = arith.constant 0 : i32
    %c0_i32_0 = arith.constant 0 : i32
    return %c0_i32, %arg1 : i32, i32
  }
  func.func @transform_4(%arg0: i32, %arg1: i32, %arg2: i32) -> (i32, i32) {
    %c0_i32 = arith.constant 0 : i32
    return %arg0, %arg1 : i32, i32
  }
}

</mosaic_0001>

<bundles_post_ra>
// kernel: tpu_custom_call.1
= control target key start
LH: loop header
LB: loop body
LE: loop exit
PB: predicated region body
PF: predicated region fallthrough
CT: control target
= control target key end

     0   :  { %9 = vsyncpa [#allocation4], 0  ;;  %s2875_s0 = inlined_call_operand.hbm [shape: bf16[2048,256], index: 0, kind: input, shape index: {}]   ;;  %s2876_s1 = inlined_call_operand.hbm [shape: bf16[256,128], index: 1, kind: input, shape index: {}]   ;;  %s2877_s2 = inlined_call_operand.vmem [shape: f32[1,128], index: 2, kind: input, shape index: {}]   ;;  %s2878_s3 = inlined_call_operand.vmem [shape: f32[1,128], index: 3, kind: input, shape index: {}]   ;;  %s2879_s4 = inlined_call_operand.hbm [shape: f32[2048,128], index: 4, kind: output, shape index: {}]  }
   0x1   :  { %11 = vsyncpa [#allocation4 + $0x1], 0 }
   0x2   :  { %12 = vsyncpa [#allocation7], 0 }
   0x3   :  { %13 = vsyncpa [#allocation5], 0 }
   0x4   :  { %15 = vsyncpa [#allocation5 + $0x1], 0  ;;  %s2351_s15 = smov 0   ;;  %s2353_s16 = smov 0  }
   0x5   :  { %s2355_s17 = smov 0   ;;  %s2357_s18 = smov 0  }
   0x6   :  { %s2359_s19 = smov 0   ;;  %s2361_s20 = smov 0  }
   0x7 LB: > { %s1841_s21 = sadd.s32 4294967295, %s2314_s20   ;;  %s1842_s22 = sadd.s32 4294967294, %s2314_s20   ;;  %s2314_s20 = sphi %s2361_s20, %s21_s20   ;;  %s2310_s19 = sphi %s2359_s19, %s2902_s19   ;;  %s2306_s18 = sphi %s2357_s18, %s2901_s18   ;;  %s2302_s17 = sphi %s2355_s17, %s2900_s17   ;;  %s2298_s16 = sphi %s2353_s16, %s2899_s16   ;;  %s2294_s15 = sphi %s2351_s15, %s2898_s15  }
   0x8   : > { %p62_p0 = scmp.ne.s32.totalorder %s2298_s16, %s2294_s15  ;;  %p2385_p1 = scmp.eq.s32.totalorder %s1841_s21, 0 }
   0x9   : > { %p2389_p2 = scmp.eq.s32.totalorder %s1841_s21, 3  ;;  %p174_p3 = scmp.eq.s32.totalorder %s1842_s22, 3 }
   0xa   : > { %s2884_s23 = scalar_select %p2385_p1, 1, 0 }
   0xb   : > { %s2885_s24 = scalar_select %p2389_p2, 1, 0 }
   0xc   : > { %p2395_p4 = por %p2385_p1, %p62_p0  ;;  %p1843_p5 = scmp.ge.s32.totalorder %s2314_s20, 1 }
   0xd   : > { %p2400_p6 = por %p174_p3, %p62_p0  ;;  %p181_p7 = scmp.lt.s32.totalorder %s2314_s20, 5 }
   0xe   : > { %s2886_s25 = scalar_select %p2395_p4, 1, 0 }
   0xf   : > { %s2887_s26 = scalar_select %p2400_p6, 1, 0 }
  0x10   : > { %p2405_p8 = pnand %p1843_p5, %p181_p7  ;;  %s2316_s28 = smov [#allocation6]  }
  0x11   : > { %s197_s29 = sshll.u32 %s2316_s28, 4  ;;  %s40_s5 = sadd.s32 1, %s2310_s19  ;;  %s198_s29 = int_to_ptr.vmem [resolvable:$true] %s197_s29 }
  0x12   : > { %s2888_s27 = scalar_select %p2405_p8, 1, 0 }
  0x13   : > { %p1986_p9 = pneg %p2405_p8  ;;  %s2170_s8 = scalar_lea.hbm %s2876_s1, 2048 }
  0x14   : > { %p2171_p11 = scmp.ne.s32.totalorder %s2876_s1, %s2170_s8  ;;  %p2177_p3 = scmp.lt.u32.totalorder %s2170_s8, %s2876_s1 }
  0x15   : > { %p2413_p10 = pnand %p1986_p9, %p2385_p1 }
  0x17   : > { %p2172_p12 = pneg %p2413_p10 }
  0x19   : > { %p2173_p13 = pnand %p2172_p12, %p2171_p11 }
  0x1b   : > { %p2174_p0 = pneg %p2173_p13 }
  0x1d   : > { %p2179_p5 = pnand %p2177_p3, %p2174_p0 }
  0x1f   : > { %2182 = shalt.err (!%p2179_p5)
}
  0x20   : > { %s2183_s13 = scalar_lea.vmem %s198_s29, 2048  ;;  %p2191_p1 = scmp.lt.s32.totalorder %s198_s29, %s198_s29 }
  0x21   : > { %p2184_p7 = scmp.ne.s32.totalorder %s198_s29, %s2183_s13  ;;  %p2192_p4 = scmp.lt.s32.totalorder %s2183_s13, %s2183_s13 }
  0x23   : > { %p2186_p9 = pnand %p2184_p7, %p2172_p12  ;;  %p2193_p8 = por %p2192_p4, %p2191_p1 }
  0x25   : > { %p2187_p6 = pneg %p2186_p9 }
  0x27   : > { %p2194_p2 = pnand %p2193_p8, %p2187_p6 }
  0x29   : > { %2197 = shalt.err (!%p2194_p2)
}
  0x2a   : > { %s2317_s14 = smov 64   ;;  %s2318_s21 = smov 4  }
  0x2b   : > { %1989 = dma.hbm_to_vmem [thread:$0]  (!%p2413_p10), %s2876_s1, 2048, %s198_s29, [#allocation7], %s2317_s14, %s2317_s14, %s2318_s21  }
  0x2c   : > { %p42_p1 = scmp.ge.s32.totalorder %s40_s5, 4  ;;  %s49_s6 = sadd.s32 1, %s2302_s17 }
  0x2d   : > { %p56_p2 = scmp.ne.s32.totalorder %s2302_s17, %s2298_s16  ;;  %p57_p4 = scmp.eq.s32.totalorder %s2314_s20, 0 }
  0x2e   : > { %s2904_s5 = smov (%p42_p1, %s40_s5), 0  ;;  %p2891_p8 = scmp.ne.s32.totalorder %s2885_s24, 0 }
  0x2f   : > { %p2440_p6 = por %p57_p4, %p56_p2  ;;  %s44_s30 = ssub.s32 %s2310_s19, %s2904_s5 }
  0x30   : > { %p2446_p11 = por %p2891_p8, %p56_p2  ;;  %p1999_p12 = scmp.lt.s32.totalorder %s2314_s20, 4 }
  0x31   : > { %p47_p10 = scmp.eq.s32.totalorder %s44_s30, 0  ;;  %s223_s29 = sand.u32 1, %s2302_s17  }
  0x32   : > { %s1848_s9 = sshll.u32 %s223_s29, 9  ;;  %s1944_s11 = sshll.u32 %s2310_s19, 13 }
  0x33   : > { %s2455_s10 = scalar_select %p47_p10, %s2302_s17, %s49_s6  }
  0x34   : > { %s2461_s14 = scalar_lea.hbm %s2875_s0, %s1944_s11  ;;  %s227_s24 = scalar_lea.vmem [#allocation3], %s1848_s9 }
  0x35   : > { %s237_s21 = sshll.u32 %s227_s24, 4  ;;  %p2467_p13 = pnand %p1999_p12, %p2440_p6  ;;  %s2463_s21 = int_to_ptr.vmem [resolvable:$true] %s237_s21 }
  0x36   : > { %s2471_s28 = scalar_lea.sflag [#allocation4], %s223_s29  ;;  %s2198_s6 = scalar_lea.hbm %s2461_s14, 8192 }
  0x37   : > { %p2199_p0 = scmp.ne.s32.totalorder %s2461_s14, %s2198_s6  ;;  %p2200_p3 = pneg %p2467_p13 }
  0x38   : > { %s2203_s7 = scalar_lea.hbm %s2875_s0, 32768  ;;  %p2204_p9 = scmp.lt.u32.totalorder %s2461_s14, %s2875_s0 }
  0x39   : > { %p2201_p5 = pnand %p2200_p3, %p2199_p0  ;;  %p2205_p1 = scmp.lt.u32.totalorder %s2203_s7, %s2198_s6 }
  0x3a   : > { %p2207_p4 = scmp.lt.u32.totalorder %s2198_s6, %s2461_s14 }
  0x3b   : > { %p2202_p7 = pneg %p2201_p5  ;;  %p2206_p2 = por %p2205_p1, %p2204_p9 }
  0x3d   : > { %p2208_p6 = por %p2207_p4, %p2206_p2 }
  0x3f   : > { %p2209_p8 = pnand %p2208_p6, %p2202_p7 }
  0x41   : > { %2212 = shalt.err (!%p2209_p8)
}
  0x42   : > { %s2213_s29 = scalar_lea.vmem %s2463_s21, 8192  ;;  %s2319_s13 = smov [#allocation3]  }
  0x43   : > { %p2214_p12 = scmp.ne.s32.totalorder %s2463_s21, %s2213_s29  ;;  %s2218_s24 = sshll.u32 %s2319_s13, 4  ;;  %s2219_s24 = int_to_ptr.vmem [resolvable:$false] %s2218_s24 }
  0x44   : > { %s2220_s30 = scalar_lea.vmem %s2219_s24, 16384  ;;  %p2221_p5 = scmp.lt.s32.totalorder %s2463_s21, %s2219_s24 }
  0x45   : > { %p2216_p10 = pnand %p2214_p12, %p2200_p3  ;;  %p2222_p9 = scmp.lt.s32.totalorder %s2220_s30, %s2213_s29 }
  0x47   : > { %p2217_p0 = pneg %p2216_p10  ;;  %p2223_p1 = por %p2222_p9, %p2221_p5 }
  0x49   : > { %p2224_p2 = pnand %p2223_p1, %p2217_p0 }
  0x4b   : > { %2227 = shalt.err (!%p2224_p2)
}
  0x4c   : > { %s2320_s6 = smov 128   ;;  %s2321_s9 = smov 8  }
  0x4d   : > { %1993 = dma.hbm_to_vmem [thread:$0]  (!%p2467_p13), %s2461_s14, 8192, %s2463_s21, %s2471_s28, %s2320_s6, %s2320_s6, %s2321_s9  }
  0x4e   : > { %p2894_p3 = scmp.ne.s32.totalorder %s2888_s27, 0 }
  0x4f   : > { %s2502_s7 = sand.u32 (!%p2894_p3), 1, %s2298_s16   ;;  %p2895_p7 = scmp.ne.s32.totalorder (!%p2894_p3), %s2886_s25, 0 }
  0x50   : > { %249 = sbr.rel (%p2894_p3) target bundleno = 511 (0x1ff), region = 36  ;;  %s1853_s11 = sshll.u32 (!%p2894_p3), %s2502_s7, 9 }
  0x51   : > { %s252_s12 = scalar_lea.sflag (!%p2894_p3), [#allocation4], %s2502_s7  ;;  %s2508_s29 = scalar_lea.vmem (!%p2894_p3), [#allocation3], %s1853_s11 }
  0x57   : > { %2281 = dma.done.wait (%p2895_p7), %s252_s12, 8192  }
  0x58   : > { %2283 = vsyncadd (%p2895_p7), %s252_s12, 4294959104  ;;  %p2896_p13 = scmp.ne.s32.totalorder %s2884_s23, 0 }
  0x5a   : > { %2285 = dma.done.wait (%p2896_p13), [#allocation7], 2048  }
  0x5b   : > { %2287 = vsyncadd (%p2896_p13), [#allocation7], 4294965248  ;;  %v2322_v0 = vmov 0   ;;  %v2058_v1 = vld [vmem:[#allocation6] sm:$0xff]   ;;  %v2059_v2 = vld [vmem:[#allocation6 + $0x8] sm:$0xff]   ;;  %s2634_s21 = scalar_lea.vmem [#allocation8], %s1853_s11 }
  0x5c   : > { %945 = vmatprep.subr.bf16.mxu0 %v2322_v0  ;;  %1946 = vmatprep.subr.bf16.mxu1 %v2322_v0  ;;  %v2060_v3 = vld [vmem:[#allocation6 + $0x10] sm:$0xff]   ;;  %v2061_v4 = vld [vmem:[#allocation6 + $0x18] sm:$0xff]   ;;  %v2062_v5 = vld [vmem:[#allocation6 + $0x20] sm:$0xff]   ;;  %s1945_s22 = sshll.u32 %s2306_s18, 13  ;;  %s1714_s28 = sshll.u32 %s2634_s21, 4  ;;  %s2823_s28 = int_to_ptr.vmem [resolvable:$true] %s1714_s28 }
  0x5d   : > { %946 = vmatpush1.bf16.msra.mxu0 %v2058_v1  ;;  %1962 = vmatpush1.bf16.msra.mxu1 %v2058_v1  ;;  %v2076_v6 = vld [vmem:[%s2508_s29 + $0x4] ss:$8 sps:$4 sm:$0xff]   ;;  %v2064_v9 = vld [vmem:[#allocation6 + $0x30] sm:$0xff]   ;;  %v2065_v10 = vld [vmem:[#allocation6 + $0x38] sm:$0xff]   ;;  %s2821_s30 = scalar_lea.hbm %s2879_s4, %s1945_s22  ;;  %s1700_s18 = scalar_lea.sflag [#allocation5], %s2502_s7 }
  0x5e   : > { %947 = vmatprep.subr.bf16.mxu0 %v2322_v0  ;;  %1947 = vmatprep.subr.bf16.mxu1 %v2322_v0  ;;  %v2063_v7 = vld [vmem:[#allocation6 + $0x28] sm:$0xff]   ;;  %v2066_v11 = vld [vmem:[#allocation6 + $0x40] sm:$0xff]   ;;  %v2068_v13 = vld [vmem:[#allocation6 + $0x50] sm:$0xff]   ;;  %s2228_s6 = scalar_lea.vmem %s2823_s28, 8192  ;;  %s2323_s9 = smov [#allocation8]  }
  0x5f   : > { %v2079_v8 = vld [vmem:[%s2508_s29 + $0x104] ss:$8 sps:$4 sm:$0xff]   ;;  %977 = vmatprep.mubr.bf16.mxu0 %v2076_v6  ;;  %v2069_v14 = vld [vmem:[#allocation6 + $0x58] sm:$0xff]   ;;  %v2072_v17 = vld [vmem:[#allocation6 + $0x70] sm:$0xff]   ;;  %p2229_p4 = scmp.ne.s32.totalorder %s2823_s28, %s2228_s6  ;;  %s2232_s11 = sshll.u32 %s2323_s9, 4  ;;  %s2233_s11 = int_to_ptr.vmem [resolvable:$false] %s2232_s11 }
  0x60   : > { %1105 = vmatprep.mubr.bf16.mxu1 %v2079_v8  ;;  %v2067_v12 = vld [vmem:[#allocation6 + $0x48] sm:$0xff]   ;;  %v2070_v15 = vld [vmem:[#allocation6 + $0x60] sm:$0xff]   ;;  %v2073_v18 = vld [vmem:[#allocation6 + $0x78] sm:$0xff]   ;;  %s2234_s12 = scalar_lea.vmem %s2233_s11, 16384  ;;  %p2235_p12 = scmp.lt.s32.totalorder %s2823_s28, %s2233_s11 }
  0x61   : > { %948 = vmatpush1.bf16.msra.mxu0 %v2059_v2  ;;  %1963 = vmatpush1.bf16.msra.mxu1 %v2059_v2  ;;  %v2071_v16 = vld [vmem:[#allocation6 + $0x68] sm:$0xff]   ;;  %v2080_v21 = vld [vmem:[%s2508_s29 + $0x14] ss:$8 sps:$4 sm:$0xff]   ;;  %v2084_v23 = vld [vmem:[%s2508_s29 + $0x10] ss:$8 sps:$4 sm:$0xff]   ;;  %p2230_p6 = pnand %p2229_p4, %p2446_p11  ;;  %p2236_p10 = scmp.lt.s32.totalorder %s2234_s12, %s2228_s6 }
  0x62   : > { %949 = vmatprep.subr.bf16.mxu0 %v2322_v0  ;;  %1948 = vmatprep.subr.bf16.mxu1 %v2322_v0  ;;  %v2074_v19 = vld [vmem:[%s2508_s29] ss:$8 sps:$4 sm:$0xff]   ;;  %v2082_v22 = vld [vmem:[%s2508_s29 + $0x114] ss:$8 sps:$4 sm:$0xff]   ;;  %v2085_v24 = vld [vmem:[%s2508_s29 + $0x110] ss:$8 sps:$4 sm:$0xff]  }
  0x63   : > { %v2077_v20 = vld [vmem:[%s2508_s29 + $0x100] ss:$8 sps:$4 sm:$0xff]   ;;  %v2086_v25 = vld [vmem:[%s2508_s29 + $0x24] ss:$8 sps:$4 sm:$0xff]   ;;  %v2092_v29 = vld [vmem:[%s2508_s29 + $0x34] ss:$8 sps:$4 sm:$0xff]   ;;  %p2231_p8 = pneg %p2230_p6  ;;  %p2237_p0 = por %p2236_p10, %p2235_p12 }
  0x64   : > { %v2088_v26 = vld [vmem:[%s2508_s29 + $0x124] ss:$8 sps:$4 sm:$0xff]   ;;  %v2090_v27 = vld [vmem:[%s2508_s29 + $0x20] ss:$8 sps:$4 sm:$0xff]   ;;  %v2094_v30 = vld [vmem:[%s2508_s29 + $0x134] ss:$8 sps:$4 sm:$0xff]  }
  0x65   : > { %950 = vmatpush1.bf16.msra.mxu0 %v2060_v3  ;;  %1964 = vmatpush1.bf16.msra.mxu1 %v2060_v3  ;;  %v2091_v28 = vld [vmem:[%s2508_s29 + $0x120] ss:$8 sps:$4 sm:$0xff]   ;;  %v2096_v31 = vld [vmem:[%s2508_s29 + $0x30] ss:$8 sps:$4 sm:$0xff]   ;;  %v2098_v33 = vld [vmem:[%s2508_s29 + $0x44] ss:$8 sps:$4 sm:$0xff]   ;;  %p2238_p5 = pnand %p2237_p0, %p2231_p8 }
  0x66   : > { %951 = vmatprep.subr.bf16.mxu0 %v2322_v0  ;;  %1949 = vmatprep.subr.bf16.mxu1 %v2322_v0  ;;  %v2097_v32 = vld [vmem:[%s2508_s29 + $0x130] ss:$8 sps:$4 sm:$0xff]   ;;  %v2100_v34 = vld [vmem:[%s2508_s29 + $0x144] ss:$8 sps:$4 sm:$0xff]   ;;  %v2102_v35 = vld [vmem:[%s2508_s29 + $0x40] ss:$8 sps:$4 sm:$0xff]  }
  0x67   : > { %v2103_v36 = vld [vmem:[%s2508_s29 + $0x140] ss:$8 sps:$4 sm:$0xff]   ;;  %v2104_v37 = vld [vmem:[%s2508_s29 + $0x54] ss:$8 sps:$4 sm:$0xff]   ;;  %v2108_v39 = vld [vmem:[%s2508_s29 + $0x50] ss:$8 sps:$4 sm:$0xff]  }
  0x68   : > { %v2106_v38 = vld [vmem:[%s2508_s29 + $0x154] ss:$8 sps:$4 sm:$0xff]   ;;  %v2109_v40 = vld [vmem:[%s2508_s29 + $0x150] ss:$8 sps:$4 sm:$0xff]   ;;  %v2110_v41 = vld [vmem:[%s2508_s29 + $0x64] ss:$8 sps:$4 sm:$0xff]  }
  0x69   : > { %952 = vmatpush1.bf16.msra.mxu0 %v2061_v4  ;;  %1965 = vmatpush1.bf16.msra.mxu1 %v2061_v4  ;;  %v2112_v42 = vld [vmem:[%s2508_s29 + $0x164] ss:$8 sps:$4 sm:$0xff]   ;;  %v2114_v43 = vld [vmem:[%s2508_s29 + $0x60] ss:$8 sps:$4 sm:$0xff]   ;;  %v2116_v45 = vld [vmem:[%s2508_s29 + $0x74] ss:$8 sps:$4 sm:$0xff]  }
  0x6a   : > { %953 = vmatprep.subr.bf16.mxu0 %v2322_v0  ;;  %1950 = vmatprep.subr.bf16.mxu1 %v2322_v0  ;;  %v2115_v44 = vld [vmem:[%s2508_s29 + $0x160] ss:$8 sps:$4 sm:$0xff]   ;;  %v2118_v46 = vld [vmem:[%s2508_s29 + $0x174] ss:$8 sps:$4 sm:$0xff]   ;;  %v2120_v47 = vld [vmem:[%s2508_s29 + $0x70] ss:$8 sps:$4 sm:$0xff]  }
  0x6b   : > { %v2121_v48 = vld [vmem:[%s2508_s29 + $0x170] ss:$8 sps:$4 sm:$0xff]   ;;  %v2122_v49 = vld [vmem:[%s2508_s29 + $0x84] ss:$8 sps:$4 sm:$0xff]   ;;  %v2126_v51 = vld [vmem:[%s2508_s29 + $0x80] ss:$8 sps:$4 sm:$0xff]  }
  0x6c   : > { %v2124_v50 = vld [vmem:[%s2508_s29 + $0x184] ss:$8 sps:$4 sm:$0xff]   ;;  %v2127_v52 = vld [vmem:[%s2508_s29 + $0x180] ss:$8 sps:$4 sm:$0xff]   ;;  %v2128_v53 = vld [vmem:[%s2508_s29 + $0x94] ss:$8 sps:$4 sm:$0xff]  }
  0x6d   : > { %954 = vmatpush1.bf16.msra.mxu0 %v2062_v5  ;;  %1966 = vmatpush1.bf16.msra.mxu1 %v2062_v5  ;;  %v2130_v54 = vld [vmem:[%s2508_s29 + $0x194] ss:$8 sps:$4 sm:$0xff]   ;;  %v2132_v55 = vld [vmem:[%s2508_s29 + $0x90] ss:$8 sps:$4 sm:$0xff]   ;;  %v2134_v57 = vld [vmem:[%s2508_s29 + $0xa4] ss:$8 sps:$4 sm:$0xff]  }
  0x6e   : > { %955 = vmatprep.subr.bf16.mxu0 %v2322_v0  ;;  %1951 = vmatprep.subr.bf16.mxu1 %v2322_v0  ;;  %v2133_v56 = vld [vmem:[%s2508_s29 + $0x190] ss:$8 sps:$4 sm:$0xff]   ;;  %v2136_v58 = vld [vmem:[%s2508_s29 + $0x1a4] ss:$8 sps:$4 sm:$0xff]   ;;  %v2138_v59 = vld [vmem:[%s2508_s29 + $0xa0] ss:$8 sps:$4 sm:$0xff]  }
  0x6f   : > { %v2139_v60 = vld [vmem:[%s2508_s29 + $0x1a0] ss:$8 sps:$4 sm:$0xff]   ;;  %v2140_v61 = vld [vmem:[%s2508_s29 + $0xb4] ss:$8 sps:$4 sm:$0xff]   ;;  %v2144_v63 = vld [vmem:[%s2508_s29 + $0xb0] ss:$8 sps:$4 sm:$0xff]  }
  0x70   : > { %v2142_v62 = vld [vmem:[%s2508_s29 + $0x1b4] ss:$8 sps:$4 sm:$0xff]   ;;  %v2146_v1 = vld [vmem:[%s2508_s29 + $0xc4] ss:$8 sps:$4 sm:$0xff]   ;;  %v2150_v3 = vld [vmem:[%s2508_s29 + $0xc0] ss:$8 sps:$4 sm:$0xff]  }
  0x71   : > { %956 = vmatpush1.bf16.msra.mxu0 %v2063_v7  ;;  %1967 = vmatpush1.bf16.msra.mxu1 %v2063_v7  ;;  %v2148_v2 = vld [vmem:[%s2508_s29 + $0x1c4] ss:$8 sps:$4 sm:$0xff]   ;;  %v2151_v4 = vld [vmem:[%s2508_s29 + $0x1c0] ss:$8 sps:$4 sm:$0xff]   ;;  %v2152_v5 = vld [vmem:[%s2508_s29 + $0xd4] ss:$8 sps:$4 sm:$0xff]  }
  0x72   : > { %957 = vmatprep.subr.bf16.mxu0 %v2322_v0  ;;  %1952 = vmatprep.subr.bf16.mxu1 %v2322_v0  ;;  %v2154_v6 = vld [vmem:[%s2508_s29 + $0x1d4] ss:$8 sps:$4 sm:$0xff]   ;;  %v2156_v7 = vld [vmem:[%s2508_s29 + $0xd0] ss:$8 sps:$4 sm:$0xff]  }
  0x73   : > { %v2157_v8 = vld [vmem:[%s2508_s29 + $0x1d0] ss:$8 sps:$4 sm:$0xff]  }
  0x75   : > { %958 = vmatpush1.bf16.msra.mxu0 %v2064_v9  ;;  %1968 = vmatpush1.bf16.msra.mxu1 %v2064_v9  ;;  %v2158_v9 = vld [vmem:[%s2508_s29 + $0xe4] ss:$8 sps:$4 sm:$0xff]  }
  0x76   : > { %959 = vmatprep.subr.bf16.mxu0 %v2322_v0  ;;  %1953 = vmatprep.subr.bf16.mxu1 %v2322_v0 }
  0x79   : > { %960 = vmatpush1.bf16.msra.mxu0 %v2065_v10  ;;  %1969 = vmatpush1.bf16.msra.mxu1 %v2065_v10  ;;  %v2160_v10 = vld [vmem:[%s2508_s29 + $0x1e4] ss:$8 sps:$4 sm:$0xff]  }
  0x7a   : > { %961 = vmatprep.subr.bf16.mxu0 %v2322_v0  ;;  %1954 = vmatprep.subr.bf16.mxu1 %v2322_v0 }
  0x7d   : > { %962 = vmatpush1.bf16.msra.mxu0 %v2066_v11  ;;  %1970 = vmatpush1.bf16.msra.mxu1 %v2066_v11  ;;  %v2162_v11 = vld [vmem:[%s2508_s29 + $0xe0] ss:$8 sps:$4 sm:$0xff]  }
  0x7e   : > { %963 = vmatprep.subr.bf16.mxu0 %v2322_v0  ;;  %1955 = vmatprep.subr.bf16.mxu1 %v2322_v0 }
  0x81   : > { %964 = vmatpush1.bf16.msra.mxu0 %v2067_v12  ;;  %1971 = vmatpush1.bf16.msra.mxu1 %v2067_v12  ;;  %v2163_v12 = vld [vmem:[%s2508_s29 + $0x1e0] ss:$8 sps:$4 sm:$0xff]  }
  0x82   : > { %965 = vmatprep.subr.bf16.mxu0 %v2322_v0  ;;  %1956 = vmatprep.subr.bf16.mxu1 %v2322_v0 }
  0x85   : > { %966 = vmatpush1.bf16.msra.mxu0 %v2068_v13  ;;  %1972 = vmatpush1.bf16.msra.mxu1 %v2068_v13  ;;  %v2164_v13 = vld [vmem:[%s2508_s29 + $0xf4] ss:$8 sps:$4 sm:$0xff]  }
  0x86   : > { %967 = vmatprep.subr.bf16.mxu0 %v2322_v0  ;;  %1957 = vmatprep.subr.bf16.mxu1 %v2322_v0 }
  0x89   : > { %968 = vmatpush1.bf16.msra.mxu0 %v2069_v14  ;;  %1973 = vmatpush1.bf16.msra.mxu1 %v2069_v14  ;;  %v2166_v14 = vld [vmem:[%s2508_s29 + $0x1f4] ss:$8 sps:$4 sm:$0xff]  }
  0x8a   : > { %969 = vmatprep.subr.bf16.mxu0 %v2322_v0  ;;  %1958 = vmatprep.subr.bf16.mxu1 %v2322_v0 }
  0x8d   : > { %970 = vmatpush1.bf16.msra.mxu0 %v2070_v15  ;;  %1974 = vmatpush1.bf16.msra.mxu1 %v2070_v15  ;;  %v2168_v15 = vld [vmem:[%s2508_s29 + $0xf0] ss:$8 sps:$4 sm:$0xff]  }
  0x8e   : > { %971 = vmatprep.subr.bf16.mxu0 %v2322_v0  ;;  %1959 = vmatprep.subr.bf16.mxu1 %v2322_v0 }
  0x91   : > { %972 = vmatpush1.bf16.msra.mxu0 %v2071_v16  ;;  %1975 = vmatpush1.bf16.msra.mxu1 %v2071_v16  ;;  %v2169_v16 = vld [vmem:[%s2508_s29 + $0x1f0] ss:$8 sps:$4 sm:$0xff]  }
  0x92   : > { %973 = vmatprep.subr.bf16.mxu0 %v2322_v0  ;;  %1960 = vmatprep.subr.bf16.mxu1 %v2322_v0 }
  0x95   : > { %974 = vmatpush1.bf16.msra.mxu0 %v2072_v17  ;;  %1976 = vmatpush1.bf16.msra.mxu1 %v2072_v17  ;;  %v2617_v17 = vld [vmem:[%s2877_s2] ss:$0 sm:$0xff] }
  0x96   : > { %975 = vmatprep.subr.bf16.mxu0 %v2322_v0  ;;  %1961 = vmatprep.subr.bf16.mxu1 %v2322_v0  ;;  %v2145_v0 = vld [vmem:[%s2508_s29 + $0x1b0] ss:$8 sps:$4 sm:$0xff]  }
  0x99   : > { %976 = vmatpush1.bf16.msra.mxu0 %v2073_v18  ;;  %1977 = vmatpush1.bf16.msra.mxu1 %v2073_v18 }
  0x9c   : > { %978 = vmatmul.mubr.bf16.vlgmr.msra.gmra.mrb[0].mxu0 %v2074_v19  ;;  %1106 = vmatmul.mubr.bf16.vlgmr.msra.gmra.mrb[0].mxu1 %v2077_v20  ;;  %v2622_v19 = vld [vmem:[%s2878_s3] ss:$0 sm:$0xff] }
  0x9d   : > { %985 = vmatprep.mubr.bf16.mxu0 %v2080_v21  ;;  %1113 = vmatprep.mubr.bf16.mxu1 %v2082_v22 }
  0xa4   : > { %986 = vmatmul.mubr.bf16.gmra.mrb[4].mxu0 %v2084_v23  ;;  %1114 = vmatmul.mubr.bf16.gmra.mrb[4].mxu1 %v2085_v24 }
  0xa5   : > { %993 = vmatprep.mubr.bf16.mxu0 %v2086_v25  ;;  %1121 = vmatprep.mubr.bf16.mxu1 %v2088_v26 }
  0xac   : > { %994 = vmatmul.mubr.bf16.gmra.mrb[8].mxu0 %v2090_v27  ;;  %1122 = vmatmul.mubr.bf16.gmra.mrb[8].mxu1 %v2091_v28 }
  0xad   : > { %1001 = vmatprep.mubr.bf16.mxu0 %v2092_v29  ;;  %1129 = vmatprep.mubr.bf16.mxu1 %v2094_v30 }
  0xb4   : > { %1002 = vmatmul.mubr.bf16.gmra.mrb[12].mxu0 %v2096_v31  ;;  %1130 = vmatmul.mubr.bf16.gmra.mrb[12].mxu1 %v2097_v32 }
  0xb5   : > { %1009 = vmatprep.mubr.bf16.mxu0 %v2098_v33  ;;  %1137 = vmatprep.mubr.bf16.mxu1 %v2100_v34 }
  0xbc   : > { %1010 = vmatmul.mubr.bf16.gmra.mrb[16].mxu0 %v2102_v35  ;;  %1138 = vmatmul.mubr.bf16.gmra.mrb[16].mxu1 %v2103_v36 }
  0xbd   : > { %1017 = vmatprep.mubr.bf16.mxu0 %v2104_v37  ;;  %1145 = vmatprep.mubr.bf16.mxu1 %v2106_v38 }
  0xc4   : > { %1018 = vmatmul.mubr.bf16.gmra.mrb[20].mxu0 %v2108_v39  ;;  %1146 = vmatmul.mubr.bf16.gmra.mrb[20].mxu1 %v2109_v40 }
  0xc5   : > { %1025 = vmatprep.mubr.bf16.mxu0 %v2110_v41  ;;  %1153 = vmatprep.mubr.bf16.mxu1 %v2112_v42 }
  0xcc   : > { %1026 = vmatmul.mubr.bf16.gmra.mrb[24].mxu0 %v2114_v43  ;;  %1154 = vmatmul.mubr.bf16.gmra.mrb[24].mxu1 %v2115_v44 }
  0xcd   : > { %1033 = vmatprep.mubr.bf16.mxu0 %v2116_v45  ;;  %1161 = vmatprep.mubr.bf16.mxu1 %v2118_v46 }
  0xd4   : > { %1034 = vmatmul.mubr.bf16.gmra.mrb[28].mxu0 %v2120_v47  ;;  %1162 = vmatmul.mubr.bf16.gmra.mrb[28].mxu1 %v2121_v48 }
  0xd5   : > { %1041 = vmatprep.mubr.bf16.mxu0 %v2122_v49  ;;  %1169 = vmatprep.mubr.bf16.mxu1 %v2124_v50 }
  0xdc   : > { %1042 = vmatmul.mubr.bf16.gmra.mrb[32].mxu0 %v2126_v51  ;;  %1170 = vmatmul.mubr.bf16.gmra.mrb[32].mxu1 %v2127_v52 }
  0xdd   : > { %1049 = vmatprep.mubr.bf16.mxu0 %v2128_v53  ;;  %1177 = vmatprep.mubr.bf16.mxu1 %v2130_v54 }
  0xe4   : > { %1050 = vmatmul.mubr.bf16.gmra.mrb[36].mxu0 %v2132_v55  ;;  %1178 = vmatmul.mubr.bf16.gmra.mrb[36].mxu1 %v2133_v56 }
  0xe5   : > { %1057 = vmatprep.mubr.bf16.mxu0 %v2134_v57  ;;  %1185 = vmatprep.mubr.bf16.mxu1 %v2136_v58 }
  0xec   : > { %1058 = vmatmul.mubr.bf16.gmra.mrb[40].mxu0 %v2138_v59  ;;  %1186 = vmatmul.mubr.bf16.gmra.mrb[40].mxu1 %v2139_v60 }
  0xed   : > { %1065 = vmatprep.mubr.bf16.mxu0 %v2140_v61  ;;  %1193 = vmatprep.mubr.bf16.mxu1 %v2142_v62 }
  0xf4   : > { %1066 = vmatmul.mubr.bf16.gmra.mrb[44].mxu0 %v2144_v63  ;;  %1194 = vmatmul.mubr.bf16.gmra.mrb[44].mxu1 %v2145_v0 }
  0xf5   : > { %1073 = vmatprep.mubr.bf16.mxu0 %v2146_v1  ;;  %1201 = vmatprep.mubr.bf16.mxu1 %v2148_v2 }
  0xfc   : > { %1074 = vmatmul.mubr.bf16.gmra.mrb[48].mxu0 %v2150_v3  ;;  %1202 = vmatmul.mubr.bf16.gmra.mrb[48].mxu1 %v2151_v4 }
  0xfd   : > { %1081 = vmatprep.mubr.bf16.mxu0 %v2152_v5  ;;  %1209 = vmatprep.mubr.bf16.mxu1 %v2154_v6 }
 0x104   : > { %1082 = vmatmul.mubr.bf16.gmra.mrb[52].mxu0 %v2156_v7  ;;  %1210 = vmatmul.mubr.bf16.gmra.mrb[52].mxu1 %v2157_v8 }
 0x105   : > { %1089 = vmatprep.mubr.bf16.mxu0 %v2158_v9  ;;  %1217 = vmatprep.mubr.bf16.mxu1 %v2160_v10 }
 0x10c   : > { %1090 = vmatmul.mubr.bf16.gmra.mrb[56].mxu0 %v2162_v11  ;;  %1218 = vmatmul.mubr.bf16.gmra.mrb[56].mxu1 %v2163_v12 }
 0x10d   : > { %1097 = vmatprep.mubr.bf16.mxu0 %v2164_v13  ;;  %1225 = vmatprep.mubr.bf16.mxu1 %v2166_v14 }
 0x114   : > { %1098 = vmatmul.mubr.bf16.gmra.mrb[60].mxu0 %v2168_v15  ;;  %1226 = vmatmul.mubr.bf16.gmra.mrb[60].mxu1 %v2169_v16 }
 0x16f   : > { %v979_v18 = vpop.f32.mrb[0].mxu0  ;;  %v1107_v20 = vpop.f32.mrb[0].mxu1 }
 0x170   : > { %v1436_v21 = vmul.f32 %v2617_v17, %v979_v18  ;;  %v1468_v22 = vmul.f32 %v2617_v17, %v1107_v20  ;;  %v981_v23 = vpop.f32.mrb[1].mxu0  ;;  %v1109_v24 = vpop.f32.mrb[1].mxu1 }
 0x171   : > { %v982_v25 = vpop.f32.mrb[2].mxu0  ;;  %v1110_v26 = vpop.f32.mrb[2].mxu1 }
 0x172   : > { %v1507_v27 = vadd.f32 %v2622_v19, %v1436_v21  ;;  %v1539_v28 = vadd.f32 %v2622_v19, %v1468_v22  ;;  %v1437_v29 = vmul.f32 %v2617_v17, %v982_v25  ;;  %v1469_v30 = vmul.f32 %v2617_v17, %v1110_v26  ;;  %v984_v31 = vpop.f32.mrb[3].mxu0  ;;  %v1112_v32 = vpop.f32.mrb[3].mxu1 }
 0x174   : > { %v1571_v33 = vmax.f32 %v1507_v27, 0.0  ;;  %v1603_v34 = vmax.f32 %v1539_v28, 0.0  ;;  %v1508_v35 = vadd.f32 %v2622_v19, %v1437_v29  ;;  %v1540_v36 = vadd.f32 %v2622_v19, %v1469_v30 }
 0x176   : > { %1635 = vst [vmem:[%s2634_s21] sm:$0xff] %v1571_v33  ;;  %1667 = vst [vmem:[%s2634_s21 + $0x100] sm:$0xff] %v1603_v34  ;;  %v1572_v37 = vmax.f32 %v1508_v35, 0.0  ;;  %v1604_v38 = vmax.f32 %v1540_v36, 0.0 }
 0x177   : > { %v987_v39 = vpop.f32.mrb[4].mxu0  ;;  %v1115_v40 = vpop.f32.mrb[4].mxu1 }
 0x178   : > { %1636 = vst [vmem:[%s2634_s21 + $0x8] sm:$0xff] %v1572_v37  ;;  %1668 = vst [vmem:[%s2634_s21 + $0x108] sm:$0xff] %v1604_v38  ;;  %v1438_v41 = vmul.f32 %v2617_v17, %v987_v39  ;;  %v1470_v42 = vmul.f32 %v2617_v17, %v1115_v40  ;;  %v989_v43 = vpop.f32.mrb[5].mxu0  ;;  %v1117_v44 = vpop.f32.mrb[5].mxu1 }
 0x179   : > { %v990_v45 = vpop.f32.mrb[6].mxu0  ;;  %v1118_v46 = vpop.f32.mrb[6].mxu1 }
 0x17a   : > { %v1509_v47 = vadd.f32 %v2622_v19, %v1438_v41  ;;  %v1541_v48 = vadd.f32 %v2622_v19, %v1470_v42  ;;  %v1439_v49 = vmul.f32 %v2617_v17, %v990_v45  ;;  %v1471_v50 = vmul.f32 %v2617_v17, %v1118_v46  ;;  %v992_v51 = vpop.f32.mrb[7].mxu0  ;;  %v1120_v52 = vpop.f32.mrb[7].mxu1 }
 0x17c   : > { %v1573_v53 = vmax.f32 %v1509_v47, 0.0  ;;  %v1605_v54 = vmax.f32 %v1541_v48, 0.0  ;;  %v1510_v55 = vadd.f32 %v2622_v19, %v1439_v49  ;;  %v1542_v56 = vadd.f32 %v2622_v19, %v1471_v50 }
 0x17e   : > { %1637 = vst [vmem:[%s2634_s21 + $0x10] sm:$0xff] %v1573_v53  ;;  %1669 = vst [vmem:[%s2634_s21 + $0x110] sm:$0xff] %v1605_v54  ;;  %v1574_v57 = vmax.f32 %v1510_v55, 0.0  ;;  %v1606_v58 = vmax.f32 %v1542_v56, 0.0 }
 0x17f   : > { %v995_v59 = vpop.f32.mrb[8].mxu0  ;;  %v1123_v60 = vpop.f32.mrb[8].mxu1 }
 0x180   : > { %1638 = vst [vmem:[%s2634_s21 + $0x18] sm:$0xff] %v1574_v57  ;;  %1670 = vst [vmem:[%s2634_s21 + $0x118] sm:$0xff] %v1606_v58  ;;  %v1440_v61 = vmul.f32 %v2617_v17, %v995_v59  ;;  %v1472_v62 = vmul.f32 %v2617_v17, %v1123_v60  ;;  %v997_v63 = vpop.f32.mrb[9].mxu0  ;;  %v1125_v0 = vpop.f32.mrb[9].mxu1 }
 0x181   : > { %v998_v1 = vpop.f32.mrb[10].mxu0  ;;  %v1126_v2 = vpop.f32.mrb[10].mxu1 }
 0x182   : > { %v1511_v3 = vadd.f32 %v2622_v19, %v1440_v61  ;;  %v1543_v4 = vadd.f32 %v2622_v19, %v1472_v62  ;;  %v1441_v5 = vmul.f32 %v2617_v17, %v998_v1  ;;  %v1473_v6 = vmul.f32 %v2617_v17, %v1126_v2  ;;  %v1000_v7 = vpop.f32.mrb[11].mxu0  ;;  %v1128_v8 = vpop.f32.mrb[11].mxu1 }
 0x184   : > { %v1575_v9 = vmax.f32 %v1511_v3, 0.0  ;;  %v1607_v10 = vmax.f32 %v1543_v4, 0.0  ;;  %v1512_v11 = vadd.f32 %v2622_v19, %v1441_v5  ;;  %v1544_v12 = vadd.f32 %v2622_v19, %v1473_v6 }
 0x186   : > { %1639 = vst [vmem:[%s2634_s21 + $0x20] sm:$0xff] %v1575_v9  ;;  %1671 = vst [vmem:[%s2634_s21 + $0x120] sm:$0xff] %v1607_v10  ;;  %v1576_v13 = vmax.f32 %v1512_v11, 0.0  ;;  %v1608_v14 = vmax.f32 %v1544_v12, 0.0 }
 0x187   : > { %v1003_v15 = vpop.f32.mrb[12].mxu0  ;;  %v1131_v16 = vpop.f32.mrb[12].mxu1 }
 0x188   : > { %1640 = vst [vmem:[%s2634_s21 + $0x28] sm:$0xff] %v1576_v13  ;;  %1672 = vst [vmem:[%s2634_s21 + $0x128] sm:$0xff] %v1608_v14  ;;  %v1442_v18 = vmul.f32 %v2617_v17, %v1003_v15  ;;  %v1474_v20 = vmul.f32 %v2617_v17, %v1131_v16  ;;  %v1005_v21 = vpop.f32.mrb[13].mxu0  ;;  %v1133_v22 = vpop.f32.mrb[13].mxu1 }
 0x189   : > { %v1006_v23 = vpop.f32.mrb[14].mxu0  ;;  %v1134_v24 = vpop.f32.mrb[14].mxu1 }
 0x18a   : > { %v1513_v25 = vadd.f32 %v2622_v19, %v1442_v18  ;;  %v1545_v26 = vadd.f32 %v2622_v19, %v1474_v20  ;;  %v1443_v27 = vmul.f32 %v2617_v17, %v1006_v23  ;;  %v1475_v28 = vmul.f32 %v2617_v17, %v1134_v24  ;;  %v1008_v29 = vpop.f32.mrb[15].mxu0  ;;  %v1136_v30 = vpop.f32.mrb[15].mxu1 }
 0x18c   : > { %v1577_v31 = vmax.f32 %v1513_v25, 0.0  ;;  %v1609_v32 = vmax.f32 %v1545_v26, 0.0  ;;  %v1514_v33 = vadd.f32 %v2622_v19, %v1443_v27  ;;  %v1546_v34 = vadd.f32 %v2622_v19, %v1475_v28 }
 0x18e   : > { %1641 = vst [vmem:[%s2634_s21 + $0x30] sm:$0xff] %v1577_v31  ;;  %1673 = vst [vmem:[%s2634_s21 + $0x130] sm:$0xff] %v1609_v32  ;;  %v1578_v35 = vmax.f32 %v1514_v33, 0.0  ;;  %v1610_v36 = vmax.f32 %v1546_v34, 0.0 }
 0x18f   : > { %v1011_v37 = vpop.f32.mrb[16].mxu0  ;;  %v1139_v38 = vpop.f32.mrb[16].mxu1 }
 0x190   : > { %1642 = vst [vmem:[%s2634_s21 + $0x38] sm:$0xff] %v1578_v35  ;;  %1674 = vst [vmem:[%s2634_s21 + $0x138] sm:$0xff] %v1610_v36  ;;  %v1444_v39 = vmul.f32 %v2617_v17, %v1011_v37  ;;  %v1476_v40 = vmul.f32 %v2617_v17, %v1139_v38  ;;  %v1013_v41 = vpop.f32.mrb[17].mxu0  ;;  %v1141_v42 = vpop.f32.mrb[17].mxu1 }
 0x191   : > { %v1014_v43 = vpop.f32.mrb[18].mxu0  ;;  %v1142_v44 = vpop.f32.mrb[18].mxu1 }
 0x192   : > { %v1515_v45 = vadd.f32 %v2622_v19, %v1444_v39  ;;  %v1547_v46 = vadd.f32 %v2622_v19, %v1476_v40  ;;  %v1445_v47 = vmul.f32 %v2617_v17, %v1014_v43  ;;  %v1477_v48 = vmul.f32 %v2617_v17, %v1142_v44  ;;  %v1016_v49 = vpop.f32.mrb[19].mxu0  ;;  %v1144_v50 = vpop.f32.mrb[19].mxu1 }
 0x194   : > { %v1579_v51 = vmax.f32 %v1515_v45, 0.0  ;;  %v1611_v52 = vmax.f32 %v1547_v46, 0.0  ;;  %v1516_v53 = vadd.f32 %v2622_v19, %v1445_v47  ;;  %v1548_v54 = vadd.f32 %v2622_v19, %v1477_v48 }
 0x196   : > { %1643 = vst [vmem:[%s2634_s21 + $0x40] sm:$0xff] %v1579_v51  ;;  %1675 = vst [vmem:[%s2634_s21 + $0x140] sm:$0xff] %v1611_v52  ;;  %v1580_v55 = vmax.f32 %v1516_v53, 0.0  ;;  %v1612_v56 = vmax.f32 %v1548_v54, 0.0 }
 0x197   : > { %v1019_v57 = vpop.f32.mrb[20].mxu0  ;;  %v1147_v58 = vpop.f32.mrb[20].mxu1 }
 0x198   : > { %1644 = vst [vmem:[%s2634_s21 + $0x48] sm:$0xff] %v1580_v55  ;;  %1676 = vst [vmem:[%s2634_s21 + $0x148] sm:$0xff] %v1612_v56  ;;  %v1446_v59 = vmul.f32 %v2617_v17, %v1019_v57  ;;  %v1478_v60 = vmul.f32 %v2617_v17, %v1147_v58  ;;  %v1021_v61 = vpop.f32.mrb[21].mxu0  ;;  %v1149_v62 = vpop.f32.mrb[21].mxu1 }
 0x199   : > { %v1022_v63 = vpop.f32.mrb[22].mxu0  ;;  %v1150_v0 = vpop.f32.mrb[22].mxu1 }
 0x19a   : > { %v1517_v1 = vadd.f32 %v2622_v19, %v1446_v59  ;;  %v1549_v2 = vadd.f32 %v2622_v19, %v1478_v60  ;;  %v1447_v3 = vmul.f32 %v2617_v17, %v1022_v63  ;;  %v1479_v4 = vmul.f32 %v2617_v17, %v1150_v0  ;;  %v1024_v5 = vpop.f32.mrb[23].mxu0  ;;  %v1152_v6 = vpop.f32.mrb[23].mxu1 }
 0x19c   : > { %v1581_v7 = vmax.f32 %v1517_v1, 0.0  ;;  %v1613_v8 = vmax.f32 %v1549_v2, 0.0  ;;  %v1518_v9 = vadd.f32 %v2622_v19, %v1447_v3  ;;  %v1550_v10 = vadd.f32 %v2622_v19, %v1479_v4 }
 0x19e   : > { %1645 = vst [vmem:[%s2634_s21 + $0x50] sm:$0xff] %v1581_v7  ;;  %1677 = vst [vmem:[%s2634_s21 + $0x150] sm:$0xff] %v1613_v8  ;;  %v1582_v11 = vmax.f32 %v1518_v9, 0.0  ;;  %v1614_v12 = vmax.f32 %v1550_v10, 0.0 }
 0x19f   : > { %v1027_v13 = vpop.f32.mrb[24].mxu0  ;;  %v1155_v14 = vpop.f32.mrb[24].mxu1 }
 0x1a0   : > { %1646 = vst [vmem:[%s2634_s21 + $0x58] sm:$0xff] %v1582_v11  ;;  %1678 = vst [vmem:[%s2634_s21 + $0x158] sm:$0xff] %v1614_v12  ;;  %v1448_v15 = vmul.f32 %v2617_v17, %v1027_v13  ;;  %v1480_v16 = vmul.f32 %v2617_v17, %v1155_v14  ;;  %v1029_v18 = vpop.f32.mrb[25].mxu0  ;;  %v1157_v20 = vpop.f32.mrb[25].mxu1 }
 0x1a1   : > { %v1030_v21 = vpop.f32.mrb[26].mxu0  ;;  %v1158_v22 = vpop.f32.mrb[26].mxu1 }
 0x1a2   : > { %v1519_v23 = vadd.f32 %v2622_v19, %v1448_v15  ;;  %v1551_v24 = vadd.f32 %v2622_v19, %v1480_v16  ;;  %v1449_v25 = vmul.f32 %v2617_v17, %v1030_v21  ;;  %v1481_v26 = vmul.f32 %v2617_v17, %v1158_v22  ;;  %v1032_v27 = vpop.f32.mrb[27].mxu0  ;;  %v1160_v28 = vpop.f32.mrb[27].mxu1 }
 0x1a4   : > { %v1583_v29 = vmax.f32 %v1519_v23, 0.0  ;;  %v1615_v30 = vmax.f32 %v1551_v24, 0.0  ;;  %v1520_v31 = vadd.f32 %v2622_v19, %v1449_v25  ;;  %v1552_v32 = vadd.f32 %v2622_v19, %v1481_v26 }
 0x1a6   : > { %1647 = vst [vmem:[%s2634_s21 + $0x60] sm:$0xff] %v1583_v29  ;;  %1679 = vst [vmem:[%s2634_s21 + $0x160] sm:$0xff] %v1615_v30  ;;  %v1584_v33 = vmax.f32 %v1520_v31, 0.0  ;;  %v1616_v34 = vmax.f32 %v1552_v32, 0.0 }
 0x1a7   : > { %v1035_v35 = vpop.f32.mrb[28].mxu0  ;;  %v1163_v36 = vpop.f32.mrb[28].mxu1 }
 0x1a8   : > { %1648 = vst [vmem:[%s2634_s21 + $0x68] sm:$0xff] %v1584_v33  ;;  %1680 = vst [vmem:[%s2634_s21 + $0x168] sm:$0xff] %v1616_v34  ;;  %v1450_v37 = vmul.f32 %v2617_v17, %v1035_v35  ;;  %v1482_v38 = vmul.f32 %v2617_v17, %v1163_v36  ;;  %v1037_v39 = vpop.f32.mrb[29].mxu0  ;;  %v1165_v40 = vpop.f32.mrb[29].mxu1 }
 0x1a9   : > { %v1038_v41 = vpop.f32.mrb[30].mxu0  ;;  %v1166_v42 = vpop.f32.mrb[30].mxu1 }
 0x1aa   : > { %v1521_v43 = vadd.f32 %v2622_v19, %v1450_v37  ;;  %v1553_v44 = vadd.f32 %v2622_v19, %v1482_v38  ;;  %v1451_v45 = vmul.f32 %v2617_v17, %v1038_v41  ;;  %v1483_v46 = vmul.f32 %v2617_v17, %v1166_v42  ;;  %v1040_v47 = vpop.f32.mrb[31].mxu0  ;;  %v1168_v48 = vpop.f32.mrb[31].mxu1 }
 0x1ac   : > { %v1585_v49 = vmax.f32 %v1521_v43, 0.0  ;;  %v1617_v50 = vmax.f32 %v1553_v44, 0.0  ;;  %v1522_v51 = vadd.f32 %v2622_v19, %v1451_v45  ;;  %v1554_v52 = vadd.f32 %v2622_v19, %v1483_v46 }
 0x1ae   : > { %1649 = vst [vmem:[%s2634_s21 + $0x70] sm:$0xff] %v1585_v49  ;;  %1681 = vst [vmem:[%s2634_s21 + $0x170] sm:$0xff] %v1617_v50  ;;  %v1586_v53 = vmax.f32 %v1522_v51, 0.0  ;;  %v1618_v54 = vmax.f32 %v1554_v52, 0.0 }
 0x1af   : > { %v1043_v55 = vpop.f32.mrb[32].mxu0  ;;  %v1171_v56 = vpop.f32.mrb[32].mxu1 }
 0x1b0   : > { %1650 = vst [vmem:[%s2634_s21 + $0x78] sm:$0xff] %v1586_v53  ;;  %1682 = vst [vmem:[%s2634_s21 + $0x178] sm:$0xff] %v1618_v54  ;;  %v1452_v57 = vmul.f32 %v2617_v17, %v1043_v55  ;;  %v1484_v58 = vmul.f32 %v2617_v17, %v1171_v56  ;;  %v1045_v59 = vpop.f32.mrb[33].mxu0  ;;  %v1173_v60 = vpop.f32.mrb[33].mxu1 }
 0x1b1   : > { %v1046_v61 = vpop.f32.mrb[34].mxu0  ;;  %v1174_v62 = vpop.f32.mrb[34].mxu1 }
 0x1b2   : > { %v1523_v63 = vadd.f32 %v2622_v19, %v1452_v57  ;;  %v1555_v0 = vadd.f32 %v2622_v19, %v1484_v58  ;;  %v1453_v1 = vmul.f32 %v2617_v17, %v1046_v61  ;;  %v1485_v2 = vmul.f32 %v2617_v17, %v1174_v62  ;;  %v1048_v3 = vpop.f32.mrb[35].mxu0  ;;  %v1176_v4 = vpop.f32.mrb[35].mxu1 }
 0x1b4   : > { %v1587_v5 = vmax.f32 %v1523_v63, 0.0  ;;  %v1619_v6 = vmax.f32 %v1555_v0, 0.0  ;;  %v1524_v7 = vadd.f32 %v2622_v19, %v1453_v1  ;;  %v1556_v8 = vadd.f32 %v2622_v19, %v1485_v2 }
 0x1b6   : > { %1651 = vst [vmem:[%s2634_s21 + $0x80] sm:$0xff] %v1587_v5  ;;  %1683 = vst [vmem:[%s2634_s21 + $0x180] sm:$0xff] %v1619_v6  ;;  %v1588_v9 = vmax.f32 %v1524_v7, 0.0  ;;  %v1620_v10 = vmax.f32 %v1556_v8, 0.0 }
 0x1b7   : > { %v1051_v11 = vpop.f32.mrb[36].mxu0  ;;  %v1179_v12 = vpop.f32.mrb[36].mxu1 }
 0x1b8   : > { %1652 = vst [vmem:[%s2634_s21 + $0x88] sm:$0xff] %v1588_v9  ;;  %1684 = vst [vmem:[%s2634_s21 + $0x188] sm:$0xff] %v1620_v10  ;;  %v1454_v13 = vmul.f32 %v2617_v17, %v1051_v11  ;;  %v1486_v14 = vmul.f32 %v2617_v17, %v1179_v12  ;;  %v1053_v15 = vpop.f32.mrb[37].mxu0  ;;  %v1181_v16 = vpop.f32.mrb[37].mxu1 }
 0x1b9   : > { %v1054_v18 = vpop.f32.mrb[38].mxu0  ;;  %v1182_v20 = vpop.f32.mrb[38].mxu1 }
 0x1ba   : > { %v1525_v21 = vadd.f32 %v2622_v19, %v1454_v13  ;;  %v1557_v22 = vadd.f32 %v2622_v19, %v1486_v14  ;;  %v1455_v23 = vmul.f32 %v2617_v17, %v1054_v18  ;;  %v1487_v24 = vmul.f32 %v2617_v17, %v1182_v20  ;;  %v1056_v25 = vpop.f32.mrb[39].mxu0  ;;  %v1184_v26 = vpop.f32.mrb[39].mxu1 }
 0x1bc   : > { %v1589_v27 = vmax.f32 %v1525_v21, 0.0  ;;  %v1621_v28 = vmax.f32 %v1557_v22, 0.0  ;;  %v1526_v29 = vadd.f32 %v2622_v19, %v1455_v23  ;;  %v1558_v30 = vadd.f32 %v2622_v19, %v1487_v24 }
 0x1be   : > { %1653 = vst [vmem:[%s2634_s21 + $0x90] sm:$0xff] %v1589_v27  ;;  %1685 = vst [vmem:[%s2634_s21 + $0x190] sm:$0xff] %v1621_v28  ;;  %v1590_v31 = vmax.f32 %v1526_v29, 0.0  ;;  %v1622_v32 = vmax.f32 %v1558_v30, 0.0 }
 0x1bf   : > { %v1059_v33 = vpop.f32.mrb[40].mxu0  ;;  %v1187_v34 = vpop.f32.mrb[40].mxu1 }
 0x1c0   : > { %1654 = vst [vmem:[%s2634_s21 + $0x98] sm:$0xff] %v1590_v31  ;;  %1686 = vst [vmem:[%s2634_s21 + $0x198] sm:$0xff] %v1622_v32  ;;  %v1456_v35 = vmul.f32 %v2617_v17, %v1059_v33  ;;  %v1488_v36 = vmul.f32 %v2617_v17, %v1187_v34  ;;  %v1061_v37 = vpop.f32.mrb[41].mxu0  ;;  %v1189_v38 = vpop.f32.mrb[41].mxu1 }
 0x1c1   : > { %v1062_v39 = vpop.f32.mrb[42].mxu0  ;;  %v1190_v40 = vpop.f32.mrb[42].mxu1 }
 0x1c2   : > { %v1527_v41 = vadd.f32 %v2622_v19, %v1456_v35  ;;  %v1559_v42 = vadd.f32 %v2622_v19, %v1488_v36  ;;  %v1457_v43 = vmul.f32 %v2617_v17, %v1062_v39  ;;  %v1489_v44 = vmul.f32 %v2617_v17, %v1190_v40  ;;  %v1064_v45 = vpop.f32.mrb[43].mxu0  ;;  %v1192_v46 = vpop.f32.mrb[43].mxu1 }
 0x1c4   : > { %v1591_v47 = vmax.f32 %v1527_v41, 0.0  ;;  %v1623_v48 = vmax.f32 %v1559_v42, 0.0  ;;  %v1528_v49 = vadd.f32 %v2622_v19, %v1457_v43  ;;  %v1560_v50 = vadd.f32 %v2622_v19, %v1489_v44 }
 0x1c6   : > { %1655 = vst [vmem:[%s2634_s21 + $0xa0] sm:$0xff] %v1591_v47  ;;  %1687 = vst [vmem:[%s2634_s21 + $0x1a0] sm:$0xff] %v1623_v48  ;;  %v1592_v51 = vmax.f32 %v1528_v49, 0.0  ;;  %v1624_v52 = vmax.f32 %v1560_v50, 0.0 }
 0x1c7   : > { %v1067_v53 = vpop.f32.mrb[44].mxu0  ;;  %v1195_v54 = vpop.f32.mrb[44].mxu1 }
 0x1c8   : > { %1656 = vst [vmem:[%s2634_s21 + $0xa8] sm:$0xff] %v1592_v51  ;;  %1688 = vst [vmem:[%s2634_s21 + $0x1a8] sm:$0xff] %v1624_v52  ;;  %v1458_v55 = vmul.f32 %v2617_v17, %v1067_v53  ;;  %v1490_v56 = vmul.f32 %v2617_v17, %v1195_v54  ;;  %v1069_v57 = vpop.f32.mrb[45].mxu0  ;;  %v1197_v58 = vpop.f32.mrb[45].mxu1 }
 0x1c9   : > { %v1070_v59 = vpop.f32.mrb[46].mxu0  ;;  %v1198_v60 = vpop.f32.mrb[46].mxu1 }
 0x1ca   : > { %v1529_v61 = vadd.f32 %v2622_v19, %v1458_v55  ;;  %v1561_v62 = vadd.f32 %v2622_v19, %v1490_v56  ;;  %v1459_v63 = vmul.f32 %v2617_v17, %v1070_v59  ;;  %v1491_v0 = vmul.f32 %v2617_v17, %v1198_v60  ;;  %v1072_v1 = vpop.f32.mrb[47].mxu0  ;;  %v1200_v2 = vpop.f32.mrb[47].mxu1 }
 0x1cc   : > { %v1593_v3 = vmax.f32 %v1529_v61, 0.0  ;;  %v1625_v4 = vmax.f32 %v1561_v62, 0.0  ;;  %v1530_v5 = vadd.f32 %v2622_v19, %v1459_v63  ;;  %v1562_v6 = vadd.f32 %v2622_v19, %v1491_v0 }
 0x1ce   : > { %1657 = vst [vmem:[%s2634_s21 + $0xb0] sm:$0xff] %v1593_v3  ;;  %1689 = vst [vmem:[%s2634_s21 + $0x1b0] sm:$0xff] %v1625_v4  ;;  %v1594_v7 = vmax.f32 %v1530_v5, 0.0  ;;  %v1626_v8 = vmax.f32 %v1562_v6, 0.0 }
 0x1cf   : > { %v1075_v9 = vpop.f32.mrb[48].mxu0  ;;  %v1203_v10 = vpop.f32.mrb[48].mxu1 }
 0x1d0   : > { %1658 = vst [vmem:[%s2634_s21 + $0xb8] sm:$0xff] %v1594_v7  ;;  %1690 = vst [vmem:[%s2634_s21 + $0x1b8] sm:$0xff] %v1626_v8  ;;  %v1460_v11 = vmul.f32 %v2617_v17, %v1075_v9  ;;  %v1492_v12 = vmul.f32 %v2617_v17, %v1203_v10  ;;  %v1077_v13 = vpop.f32.mrb[49].mxu0  ;;  %v1205_v14 = vpop.f32.mrb[49].mxu1 }
 0x1d1   : > { %v1078_v15 = vpop.f32.mrb[50].mxu0  ;;  %v1206_v16 = vpop.f32.mrb[50].mxu1 }
 0x1d2   : > { %v1531_v18 = vadd.f32 %v2622_v19, %v1460_v11  ;;  %v1563_v20 = vadd.f32 %v2622_v19, %v1492_v12  ;;  %v1461_v21 = vmul.f32 %v2617_v17, %v1078_v15  ;;  %v1493_v22 = vmul.f32 %v2617_v17, %v1206_v16  ;;  %v1080_v23 = vpop.f32.mrb[51].mxu0  ;;  %v1208_v24 = vpop.f32.mrb[51].mxu1 }
 0x1d4   : > { %v1595_v25 = vmax.f32 %v1531_v18, 0.0  ;;  %v1627_v26 = vmax.f32 %v1563_v20, 0.0  ;;  %v1532_v27 = vadd.f32 %v2622_v19, %v1461_v21  ;;  %v1564_v28 = vadd.f32 %v2622_v19, %v1493_v22 }
 0x1d6   : > { %1659 = vst [vmem:[%s2634_s21 + $0xc0] sm:$0xff] %v1595_v25  ;;  %1691 = vst [vmem:[%s2634_s21 + $0x1c0] sm:$0xff] %v1627_v26  ;;  %v1596_v29 = vmax.f32 %v1532_v27, 0.0  ;;  %v1628_v30 = vmax.f32 %v1564_v28, 0.0 }
 0x1d7   : > { %v1083_v31 = vpop.f32.mrb[52].mxu0  ;;  %v1211_v32 = vpop.f32.mrb[52].mxu1 }
 0x1d8   : > { %1660 = vst [vmem:[%s2634_s21 + $0xc8] sm:$0xff] %v1596_v29  ;;  %1692 = vst [vmem:[%s2634_s21 + $0x1c8] sm:$0xff] %v1628_v30  ;;  %v1462_v33 = vmul.f32 %v2617_v17, %v1083_v31  ;;  %v1494_v34 = vmul.f32 %v2617_v17, %v1211_v32  ;;  %v1085_v35 = vpop.f32.mrb[53].mxu0  ;;  %v1213_v36 = vpop.f32.mrb[53].mxu1 }
 0x1d9   : > { %v1086_v37 = vpop.f32.mrb[54].mxu0  ;;  %v1214_v38 = vpop.f32.mrb[54].mxu1 }
 0x1da   : > { %v1533_v39 = vadd.f32 %v2622_v19, %v1462_v33  ;;  %v1565_v40 = vadd.f32 %v2622_v19, %v1494_v34  ;;  %v1463_v41 = vmul.f32 %v2617_v17, %v1086_v37  ;;  %v1495_v42 = vmul.f32 %v2617_v17, %v1214_v38  ;;  %v1088_v43 = vpop.f32.mrb[55].mxu0  ;;  %v1216_v44 = vpop.f32.mrb[55].mxu1 }
 0x1dc   : > { %v1597_v45 = vmax.f32 %v1533_v39, 0.0  ;;  %v1629_v46 = vmax.f32 %v1565_v40, 0.0  ;;  %v1534_v47 = vadd.f32 %v2622_v19, %v1463_v41  ;;  %v1566_v48 = vadd.f32 %v2622_v19, %v1495_v42 }
 0x1de   : > { %1661 = vst [vmem:[%s2634_s21 + $0xd0] sm:$0xff] %v1597_v45  ;;  %1693 = vst [vmem:[%s2634_s21 + $0x1d0] sm:$0xff] %v1629_v46  ;;  %v1598_v49 = vmax.f32 %v1534_v47, 0.0  ;;  %v1630_v50 = vmax.f32 %v1566_v48, 0.0 }
 0x1df   : > { %v1091_v51 = vpop.f32.mrb[56].mxu0  ;;  %v1219_v52 = vpop.f32.mrb[56].mxu1 }
 0x1e0   : > { %1662 = vst [vmem:[%s2634_s21 + $0xd8] sm:$0xff] %v1598_v49  ;;  %1694 = vst [vmem:[%s2634_s21 + $0x1d8] sm:$0xff] %v1630_v50  ;;  %v1464_v53 = vmul.f32 %v2617_v17, %v1091_v51  ;;  %v1496_v54 = vmul.f32 %v2617_v17, %v1219_v52  ;;  %v1093_v55 = vpop.f32.mrb[57].mxu0  ;;  %v1221_v56 = vpop.f32.mrb[57].mxu1 }
 0x1e1   : > { %v1094_v57 = vpop.f32.mrb[58].mxu0  ;;  %v1222_v58 = vpop.f32.mrb[58].mxu1 }
 0x1e2   : > { %v1535_v59 = vadd.f32 %v2622_v19, %v1464_v53  ;;  %v1567_v60 = vadd.f32 %v2622_v19, %v1496_v54  ;;  %v1465_v61 = vmul.f32 %v2617_v17, %v1094_v57  ;;  %v1497_v62 = vmul.f32 %v2617_v17, %v1222_v58  ;;  %v1096_v63 = vpop.f32.mrb[59].mxu0  ;;  %v1224_v0 = vpop.f32.mrb[59].mxu1 }
 0x1e4   : > { %v1599_v1 = vmax.f32 %v1535_v59, 0.0  ;;  %v1631_v2 = vmax.f32 %v1567_v60, 0.0  ;;  %v1536_v3 = vadd.f32 %v2622_v19, %v1465_v61  ;;  %v1568_v4 = vadd.f32 %v2622_v19, %v1497_v62 }
 0x1e6   : > { %1663 = vst [vmem:[%s2634_s21 + $0xe0] sm:$0xff] %v1599_v1  ;;  %1695 = vst [vmem:[%s2634_s21 + $0x1e0] sm:$0xff] %v1631_v2  ;;  %v1600_v5 = vmax.f32 %v1536_v3, 0.0  ;;  %v1632_v6 = vmax.f32 %v1568_v4, 0.0 }
 0x1e7   : > { %v1099_v7 = vpop.f32.mrb[60].mxu0  ;;  %v1227_v8 = vpop.f32.mrb[60].mxu1 }
 0x1e8   : > { %1664 = vst [vmem:[%s2634_s21 + $0xe8] sm:$0xff] %v1600_v5  ;;  %1696 = vst [vmem:[%s2634_s21 + $0x1e8] sm:$0xff] %v1632_v6  ;;  %v1466_v9 = vmul.f32 %v2617_v17, %v1099_v7  ;;  %v1498_v10 = vmul.f32 %v2617_v17, %v1227_v8  ;;  %v1101_v11 = vpop.f32.mrb[61].mxu0  ;;  %v1229_v12 = vpop.f32.mrb[61].mxu1 }
 0x1e9   : > { %v1102_v13 = vpop.f32.mrb[62].mxu0  ;;  %v1230_v14 = vpop.f32.mrb[62].mxu1 }
 0x1ea   : > { %v1537_v15 = vadd.f32 %v2622_v19, %v1466_v9  ;;  %v1569_v16 = vadd.f32 %v2622_v19, %v1498_v10  ;;  %v1467_v18 = vmul.f32 %v2617_v17, %v1102_v13  ;;  %v1499_v20 = vmul.f32 %v2617_v17, %v1230_v14  ;;  %v1104_v21 = vpop.f32.mrb[63].mxu0  ;;  %v1232_v22 = vpop.f32.mrb[63].mxu1 }
 0x1ec   : > { %v1601_v23 = vmax.f32 %v1537_v15, 0.0  ;;  %v1633_v24 = vmax.f32 %v1569_v16, 0.0  ;;  %v1538_v25 = vadd.f32 %v2622_v19, %v1467_v18  ;;  %v1570_v26 = vadd.f32 %v2622_v19, %v1499_v20 }
 0x1ee   : > { %1665 = vst [vmem:[%s2634_s21 + $0xf0] sm:$0xff] %v1601_v23  ;;  %1697 = vst [vmem:[%s2634_s21 + $0x1f0] sm:$0xff] %v1633_v24  ;;  %v1602_v17 = vmax.f32 %v1538_v25, 0.0  ;;  %v1634_v27 = vmax.f32 %v1570_v26, 0.0 }
 0x1f0   : > { %1666 = vst [vmem:[%s2634_s21 + $0xf8] sm:$0xff] %v1602_v17  ;;  %1698 = vst [vmem:[%s2634_s21 + $0x1f8] sm:$0xff] %v1634_v27 }
 0x1f1   : > { %2241 = shalt.err (!%p2238_p5)
}
 0x1f2   : > { %s2242_s29 = scalar_lea.hbm %s2821_s30, 8192  ;;  %s2246_s27 = scalar_lea.hbm %s2879_s4, 32768 }
 0x1f3   : > { %p2243_p9 = scmp.ne.s32.totalorder %s2821_s30, %s2242_s29  ;;  %p2247_p3 = scmp.lt.u32.totalorder %s2821_s30, %s2879_s4 }
 0x1f4   : > { %p2248_p7 = scmp.lt.u32.totalorder %s2246_s27, %s2242_s29  ;;  %p2250_p4 = scmp.lt.u32.totalorder %s2242_s29, %s2821_s30 }
 0x1f5   : > { %p2244_p1 = pnand %p2243_p9, %p2446_p11 }
 0x1f6   : > { %p2249_p13 = por %p2248_p7, %p2247_p3 }
 0x1f7   : > { %p2245_p2 = pneg %p2244_p1 }
 0x1f8   : > { %p2251_p6 = por %p2250_p4, %p2249_p13 }
 0x1fa   : > { %p2252_p8 = pnand %p2251_p6, %p2245_p2 }
 0x1fc   : > { %2255 = shalt.err (!%p2252_p8)
}
 0x1fd   : > { %s2324_s22 = smov 128   ;;  %s2325_s13 = smov 8  }
 0x1fe   : > { %1984 = dma.vmem_to_hbm [thread:$0]  (%p2446_p11), %s2823_s28, 8192, %s2821_s30, %s1700_s18, %s2324_s22, %s2324_s22, %s2325_s13  }
 0x1ff PF: > { %p2001_p12 = scmp.ge.s32.totalorder %s2314_s20, 2  ;;  %s1729_s24 = sand.u32 1, %s2294_s15  }
 0x200   : > { %p2897_p10 = scmp.ne.s32.totalorder %s2887_s26, 0  ;;  %s1730_s6 = scalar_lea.sflag [#allocation5], %s1729_s24 }
 0x202   : > { %p1995_p0 = pnand %p2001_p12, %p2897_p10 }
 0x204   : > { %2289 = dma.done.wait (!%p1995_p0), %s1730_s6, 8192  }
 0x205   : > { %2291 = vsyncadd (!%p1995_p0), %s1730_s6, 4294959104  ;;  %s21_s20 = sadd.s32 1, %s2314_s20   ;;  %s2898_s15 = smov %s2298_s16 }
 0x206   : > { %p18_p5 = scmp.ge.s32.totalorder %s21_s20, 6   ;;  %s2899_s16 = smov %s2302_s17 }
 0x207   : > { %s2900_s17 = smov %s2455_s10  ;;  %s2901_s18 = smov %s2310_s19 }
 0x208   : > { %s2902_s19 = smov %s2904_s5  ;;  %20 = sbr.rel (!%p18_p5) target bundleno = 7 (0x7), region = 100 }
 0x20f   :  { %1735 = vsyncpa [#allocation4], 1 }
 0x210   :  { %1737 = vsyncpa [#allocation4 + $0x1], 1 }
 0x211   :  { %1738 = vsyncpa [#allocation7], 1 }
 0x212   :  { %1739 = vsyncpa [#allocation5], 1 }
 0x213   :  { %1741 = vsyncpa [#allocation5 + $0x1], 1 }

</bundles_post_ra>
